<compile_context>
chip_gen: v7x
topology: tpu7x:2x2x1
jax: 0.10.0
libtpu: 0.0.40
codegen_flags: <defaults>
</compile_context>

<pallas_src>
import jax
import jax.numpy as jnp
from jax import lax
from jax.experimental import pallas as pl
from jax.experimental.pallas import tpu as pltpu

hidden_size = [32, 32, 32]
input_size = 2 + 2          # = 4
num_classes = 2

LANE = 128                  # vreg lane width
MAX_TILE_B = 4096           # batch rows (lanes) per grid step
H = 32                      # packed width (max layer dim)
NUM_LAYERS = 4


def _round_up(n, m):
    return ((n + m - 1) // m) * m


def vnet_kernel(x_ref, w_ref, b_ref, o_ref):
    """One batch tile of the 4-layer MLP.

    x_ref: (TILE_B, input_size) f32    -- native PyTorch layout (no transpose)
    w_ref: (4, 32, 32) bf16            -- packed, zero-padded weights (out, in)
    b_ref: (4, 32, 1)  f32             -- packed, zero-padded biases
    o_ref: (num_classes, TILE_B) f32   -- feature-major => lane-dense stores
    """
    x = x_ref[...].astype(jnp.bfloat16)                         # (TB, 4)

    # Layer 1: W1 @ x^T via the MXU transposed-operand path -> (32, TB)
    w1 = w_ref[0, :, 0:input_size]                              # (32, 4) bf16
    h = lax.dot_general(w1, x,
                        dimension_numbers=(((1,), (1,)), ((), ())),
                        preferred_element_type=jnp.float32)
    h = jnp.tanh(h + b_ref[0])                                  # (32, TB) f32

    # Layers 2 and 3: (32, 32) @ (32, TB), bf16 operands, f32 accumulate
    h = jnp.tanh(jnp.dot(w_ref[1], h.astype(jnp.bfloat16),
                         preferred_element_type=jnp.float32) + b_ref[1])
    h = jnp.tanh(jnp.dot(w_ref[2], h.astype(jnp.bfloat16),
                         preferred_element_type=jnp.float32) + b_ref[2])

    # Layer 4 (no activation): (2, 32) @ (32, TB) -> (2, TB)
    out = jnp.dot(w_ref[3, 0:num_classes, :], h.astype(jnp.bfloat16),
                  preferred_element_type=jnp.float32) + b_ref[3, 0:num_classes]
    o_ref[...] = out.astype(o_ref.dtype)


@jax.jit
def vnet_forward(x, w_packed, b_packed):
    """x: (B, input_size) float32 (PyTorch layout). Returns (B, num_classes)."""
    B = x.shape[0]

    # Tile selection: >=2 grid steps when B > 128 (v7x dual-TC sharding),
    # capped so the per-step VMEM working set stays small on every generation.
    half = -(-B // 2)
    tile_b = min(MAX_TILE_B, _round_up(half, LANE))
    b_pad = _round_up(B, tile_b)

    x = x.astype(jnp.float32)
    if b_pad != B:
        x = jnp.pad(x, ((0, b_pad - B), (0, 0)))     # tiny (< tile_b rows)

    grid = (b_pad // tile_b,)

    out_t = pl.pallas_call(
        vnet_kernel,
        out_shape=jax.ShapeDtypeStruct((num_classes, b_pad), jnp.float32),
        grid=grid,
        in_specs=[
            # x streams per batch tile; Pallas double-buffers the DMA.
            pl.BlockSpec((tile_b, input_size), lambda i: (i, 0)),
            # Packed weights / biases: constant block index -> resident in VMEM.
            pl.BlockSpec(w_packed.shape, lambda i: (0, 0, 0)),
            pl.BlockSpec(b_packed.shape, lambda i: (0, 0, 0)),
        ],
        out_specs=pl.BlockSpec((num_classes, tile_b), lambda i: (0, i)),
        compiler_params=pltpu.CompilerParams(
            dimension_semantics=("parallel",)),
    )(x, w_packed, b_packed)

    return out_t[:, :B].T                             # (B, num_classes)


def init_params(key):
    """Deterministic init mimicking PyTorch nn.Linear default
    (uniform in [-1/sqrt(fan_in), 1/sqrt(fan_in)]).
    Weights stored as (out, in), biases as (out, 1)."""
    dims = [input_size, hidden_size[0], hidden_size[1], hidden_size[2],
            num_classes]
    params = {}
    keys = jax.random.split(key, 2 * (len(dims) - 1))
    for i in range(len(dims) - 1):
        fan_in, fan_out = dims[i], dims[i + 1]
        bound = 1.0 / jnp.sqrt(jnp.float32(fan_in))
        kw, kb = keys[2 * i], keys[2 * i + 1]
        params[f"w{i+1}"] = jax.random.uniform(
            kw, (fan_out, fan_in), jnp.float32, -bound, bound)
        params[f"b{i+1}"] = jax.random.uniform(
            kb, (fan_out, 1), jnp.float32, -bound, bound)
    return params


def pack_params(params):
    """Pack the 8 per-layer tensors into two resident arrays (done once,
    outside the jitted forward): bf16 weight cube + f32 bias cube."""
    w = jnp.zeros((NUM_LAYERS, H, H), jnp.float32)
    w = w.at[0, :, :input_size].set(params["w1"])
    w = w.at[1, :, :].set(params["w2"])
    w = w.at[2, :, :].set(params["w3"])
    w = w.at[3, :num_classes, :].set(params["w4"])

    b = jnp.zeros((NUM_LAYERS, H, 1), jnp.float32)
    b = b.at[0, :, :].set(params["b1"])
    b = b.at[1, :, :].set(params["b2"])
    b = b.at[2, :, :].set(params["b3"])
    b = b.at[3, :num_classes, :].set(params["b4"])

    return w.astype(jnp.bfloat16), b


def vnet_reference(x, params):
    """Pure-JAX f32 reference of the same forward pass (sanity checking;
    also the preferred dispatch for tiny batches where launch overhead wins)."""
    h = jnp.tanh(x @ params["w1"].T + params["b1"].T)
    h = jnp.tanh(h @ params["w2"].T + params["b2"].T)
    h = jnp.tanh(h @ params["w3"].T + params["b3"].T)
    return h @ params["w4"].T + params["b4"].T


if __name__ == "__main__":
    key = jax.random.PRNGKey(0)
    k_params, k_x = jax.random.split(key)

    params = init_params(k_params)
    w_packed, b_packed = pack_params(params)

    # Small deployed-style batch (single grid step) and a multi-tile batch
    # (exercises the 2-step grid / row padding path).
    for batch in (8, 300):
        kx = jax.random.fold_in(k_x, batch)
        x = jax.random.normal(kx, (batch, input_size), dtype=jnp.float32)

        out = jax.block_until_ready(vnet_forward(x, w_packed, b_packed))
        ref = vnet_reference(x, params)

        assert out.shape == (batch, num_classes)
        # bf16 matmuls => loosened tolerance vs the f32 reference.
        assert jnp.allclose(out, ref, atol=5e-2, rtol=5e-2), (
            f"mismatch vs reference at batch={batch}: "
            f"max abs err {jnp.max(jnp.abs(out - ref))}")

    print("KERNEL_OK")
</pallas_src>

<mosaic_0001>
module attributes {stable_mosaic.version = 11 : i64} {
  func.func @vnet_kernel(%arg0: i32, %arg1: memref<128x4xf32, #tpu.memory_space<vmem>>, %arg2: memref<4x32x32xbf16, #tpu.memory_space<vmem>>, %arg3: memref<4x32x1xf32, #tpu.memory_space<vmem>>, %arg4: memref<2x128xf32, #tpu.memory_space<vmem>>) attributes {dimension_semantics = [#tpu.dimension_semantics<parallel>], iteration_bounds = array<i64: 1>, scalar_prefetch = 0 : i64, scratch_operands = 0 : i64, tpu.core_type = #tpu.core_type<tc>, window_params = [{transform_indices = @transform_0, window_bounds = array<i64: 128, 4>}, {pipeline_mode = #tpu.pipeline_mode<synchronous>, transform_indices = @transform_1, window_bounds = array<i64: 4, 32, 32>}, {pipeline_mode = #tpu.pipeline_mode<synchronous>, transform_indices = @transform_2, window_bounds = array<i64: 4, 32, 1>}, {transform_indices = @transform_3, window_bounds = array<i64: 2, 128>}]} {
    %c0 = arith.constant 0 : index
    %c0_0 = arith.constant 0 : index
    %0 = vector.load %arg1[%c0, %c0_0] : memref<128x4xf32, #tpu.memory_space<vmem>>, vector<128x4xf32>
    %1 = arith.truncf %0 : vector<128x4xf32> to vector<128x4xbf16>
    %c0_1 = arith.constant 0 : index
    %c0_2 = arith.constant 0 : index
    %c0_3 = arith.constant 0 : index
    %2 = vector.load %arg2[%c0_1, %c0_2, %c0_3] : memref<4x32x32xbf16, #tpu.memory_space<vmem>>, vector<1x32x4xbf16>
    %3 = vector.shape_cast %2 : vector<1x32x4xbf16> to vector<32x4xbf16>
    %cst = arith.constant dense<0.000000e+00> : vector<32x128xf32>
    %4 = tpu.matmul %3, %1, %cst {dimension_numbers = #tpu.dot_dimension_numbers<[1], [1], [0], [0], [0, 0, 1, 0], [], []>} : vector<32x4xbf16>, vector<128x4xbf16>, vector<32x128xf32> -> vector<32x128xf32>
    %c0_4 = arith.constant 0 : index
    %c0_5 = arith.constant 0 : index
    %c0_6 = arith.constant 0 : index
    %5 = vector.load %arg3[%c0_4, %c0_5, %c0_6] : memref<4x32x1xf32, #tpu.memory_space<vmem>>, vector<1x32x1xf32>
    %6 = vector.shape_cast %5 : vector<1x32x1xf32> to vector<32x1xf32>
    %7 = vector.broadcast %6 : vector<32x1xf32> to vector<32x128xf32>
    %8 = arith.addf %4, %7 : vector<32x128xf32>
    %9 = math.tanh %8 : vector<32x128xf32>
    %c1 = arith.constant 1 : index
    %c0_7 = arith.constant 0 : index
    %c0_8 = arith.constant 0 : index
    %10 = vector.load %arg2[%c1, %c0_7, %c0_8] : memref<4x32x32xbf16, #tpu.memory_space<vmem>>, vector<1x32x32xbf16>
    %11 = vector.shape_cast %10 : vector<1x32x32xbf16> to vector<32x32xbf16>
    %12 = arith.truncf %9 : vector<32x128xf32> to vector<32x128xbf16>
    %cst_9 = arith.constant dense<0.000000e+00> : vector<32x128xf32>
    %13 = tpu.matmul %11, %12, %cst_9 {dimension_numbers = #tpu.dot_dimension_numbers<[1], [0], [0], [1], [0, 0, 1, 1], [], []>} : vector<32x32xbf16>, vector<32x128xbf16>, vector<32x128xf32> -> vector<32x128xf32>
    %c1_10 = arith.constant 1 : index
    %c0_11 = arith.constant 0 : index
    %c0_12 = arith.constant 0 : index
    %14 = vector.load %arg3[%c1_10, %c0_11, %c0_12] : memref<4x32x1xf32, #tpu.memory_space<vmem>>, vector<1x32x1xf32>
    %15 = vector.shape_cast %14 : vector<1x32x1xf32> to vector<32x1xf32>
    %16 = vector.broadcast %15 : vector<32x1xf32> to vector<32x128xf32>
    %17 = arith.addf %13, %16 : vector<32x128xf32>
    %18 = math.tanh %17 : vector<32x128xf32>
    %c2 = arith.constant 2 : index
    %c0_13 = arith.constant 0 : index
    %c0_14 = arith.constant 0 : index
    %19 = vector.load %arg2[%c2, %c0_13, %c0_14] : memref<4x32x32xbf16, #tpu.memory_space<vmem>>, vector<1x32x32xbf16>
    %20 = vector.shape_cast %19 : vector<1x32x32xbf16> to vector<32x32xbf16>
    %21 = arith.truncf %18 : vector<32x128xf32> to vector<32x128xbf16>
    %cst_15 = arith.constant dense<0.000000e+00> : vector<32x128xf32>
    %22 = tpu.matmul %20, %21, %cst_15 {dimension_numbers = #tpu.dot_dimension_numbers<[1], [0], [0], [1], [0, 0, 1, 1], [], []>} : vector<32x32xbf16>, vector<32x128xbf16>, vector<32x128xf32> -> vector<32x128xf32>
    %c2_16 = arith.constant 2 : index
    %c0_17 = arith.constant 0 : index
    %c0_18 = arith.constant 0 : index
    %23 = vector.load %arg3[%c2_16, %c0_17, %c0_18] : memref<4x32x1xf32, #tpu.memory_space<vmem>>, vector<1x32x1xf32>
    %24 = vector.shape_cast %23 : vector<1x32x1xf32> to vector<32x1xf32>
    %25 = vector.broadcast %24 : vector<32x1xf32> to vector<32x128xf32>
    %26 = arith.addf %22, %25 : vector<32x128xf32>
    %27 = math.tanh %26 : vector<32x128xf32>
    %c3 = arith.constant 3 : index
    %c0_19 = arith.constant 0 : index
    %c0_20 = arith.constant 0 : index
    %28 = vector.load %arg2[%c3, %c0_19, %c0_20] : memref<4x32x32xbf16, #tpu.memory_space<vmem>>, vector<1x2x32xbf16>
    %29 = vector.shape_cast %28 : vector<1x2x32xbf16> to vector<2x32xbf16>
    %30 = arith.truncf %27 : vector<32x128xf32> to vector<32x128xbf16>
    %cst_21 = arith.constant dense<0.000000e+00> : vector<2x128xf32>
    %31 = tpu.matmul %29, %30, %cst_21 {dimension_numbers = #tpu.dot_dimension_numbers<[1], [0], [0], [1], [0, 0, 1, 1], [], []>} : vector<2x32xbf16>, vector<32x128xbf16>, vector<2x128xf32> -> vector<2x128xf32>
    %c3_22 = arith.constant 3 : index
    %c0_23 = arith.constant 0 : index
    %c0_24 = arith.constant 0 : index
    %32 = vector.load %arg3[%c3_22, %c0_23, %c0_24] : memref<4x32x1xf32, #tpu.memory_space<vmem>>, vector<1x2x1xf32>
    %33 = vector.shape_cast %32 : vector<1x2x1xf32> to vector<2x1xf32>
    %34 = vector.broadcast %33 : vector<2x1xf32> to vector<2x128xf32>
    %35 = arith.addf %31, %34 : vector<2x128xf32>
    %c0_25 = arith.constant 0 : index
    %c0_26 = arith.constant 0 : index
    %36 = vector.load %arg4[%c0_25, %c0_26] : memref<2x128xf32, #tpu.memory_space<vmem>>, vector<2x128xf32>
    tpu.vector_store %arg4[%c0_25, %c0_26], %35 {strides = array<i32>} : memref<2x128xf32, #tpu.memory_space<vmem>>, vector<2x128xf32>,
    return
  }
  func.func @transform_0(%arg0: i32) -> (i32, i32) {
    %c0_i32 = arith.constant 0 : i32
    %c0_i32_0 = arith.constant 0 : i32
    return %arg0, %c0_i32 : i32, i32
  }
  func.func @transform_1(%arg0: i32) -> (i32, i32, i32) {
    %c0_i32 = arith.constant 0 : i32
    %c0_i32_0 = arith.constant 0 : i32
    %c0_i32_1 = arith.constant 0 : i32
    %c0_i32_2 = arith.constant 0 : i32
    return %c0_i32, %c0_i32_0, %c0_i32_1 : i32, i32, i32
  }
  func.func @transform_2(%arg0: i32) -> (i32, i32, i32) {
    %c0_i32 = arith.constant 0 : i32
    %c0_i32_0 = arith.constant 0 : i32
    %c0_i32_1 = arith.constant 0 : i32
    %c0_i32_2 = arith.constant 0 : i32
    return %c0_i32, %c0_i32_0, %c0_i32_1 : i32, i32, i32
  }
  func.func @transform_3(%arg0: i32) -> (i32, i32) {
    %c0_i32 = arith.constant 0 : i32
    %c0_i32_0 = arith.constant 0 : i32
    return %c0_i32, %arg0 : i32, i32
  }
}

</mosaic_0001>

<bundles_post_ra>
// kernel: vnet_forward.1
= control target key start
LH: loop header
LB: loop body
LE: loop exit
PB: predicated region body
PF: predicated region fallthrough
CT: control target
= control target key end

     0   :  { %vm77_vm0 = vcmask 31744   ;;  %v562_v3 = vmov 0   ;;  %vm203_vm1 = vcmask 261120   ;;  %vm564_vm2 = vmmov 0   ;;  %s719_s0 = inlined_call_operand.vmem [shape: f32[128,4], index: 0, kind: input, shape index: {}]   ;;  %s720_s1 = inlined_call_operand.vmem [shape: bf16[4,32,32], index: 1, kind: input, shape index: {}]   ;;  %s721_s2 = inlined_call_operand.vmem [shape: f32[4,32,1], index: 2, kind: input, shape index: {}]   ;;  %s722_s3 = inlined_call_operand.vmem [shape: f32[2,128], index: 3, kind: output, shape index: {}]  }
   0x1   :  { %v15_v0 = vld [vmem:[%s719_s0] sm:$0xff]  ;;  %v16_v1 = vld [vmem:[%s719_s0 + $0x8] sm:$0xff]  ;;  %v17_v2 = vld [vmem:[%s719_s0 + $0x10] sm:$0xff]  ;;  %530 = vset.pattern.permute.xlu0 %v562_v3  ;;  %531 = vset.pattern.permute.xlu1 %v562_v3 }
   0x2   :  { %v31_v4 = vpack.c.bf16 %v16_v1, %v15_v0  ;;  %v18_v5 = vld [vmem:[%s719_s0 + $0x18] sm:$0xff]  ;;  %v19_v8 = vld [vmem:[%s719_s0 + $0x20] sm:$0xff]  ;;  %v20_v9 = vld [vmem:[%s719_s0 + $0x28] sm:$0xff] }
   0x3   :  { %v32_v6 = vpack.c.bf16 %v18_v5, %v17_v2  ;;  %v532_v10 = vld [vmem:[%s720_s1] sm:$0xff]   ;;  %v45_v12 = vld [vmem:[%s721_s2 + $0x10] sm:$0xff]  ;;  %v33_v14 = vpack.c.bf16 %v20_v9, %v19_v8  ;;  %v44_v15 = vld [vmem:[%s721_s2 + $0x8] sm:$0xff] }
   0x4   :  { %519 = vmatprep.subr.msk.bf16.mxu0 %vm77_vm0, %v31_v4  ;;  %v85_v7 = vsel %vm77_vm0, %v31_v4, 0  ;;  %v43_v11 = vld [vmem:[%s721_s2] sm:$0xff]  ;;  %491 = vmatprep.mubr.msk.bf16.mxu0 %vm77_vm0, %v532_v10  ;;  %v46_v16 = vld [vmem:[%s721_s2 + $0x18] sm:$0xff]  ;;  %v21_v18 = vld [vmem:[%s719_s0 + $0x30] sm:$0xff] }
   0x5   :  { %476 = vmatpush3.bf16.xpose.msra.mxu0 %v85_v7  ;;  %49 = vperm.xlu0 %530, %v43_v11   ;;  %v88_v13 = vsel %vm77_vm0, %v32_v6, 0  ;;  %v431_v17 = vld [vmem:[%s721_s2 + $0x20] sm:$0xff]  ;;  %v22_v19 = vld [vmem:[%s719_s0 + $0x38] sm:$0xff]  ;;  %v432_v20 = vld [vmem:[%s721_s2 + $0x28] sm:$0xff]  ;;  %v91_v21 = vsel %vm77_vm0, %v33_v14, 0 }
   0x6   :  { %520 = vmatprep.subr.msk.bf16.mxu0 %vm77_vm0, %v32_v6  ;;  %59 = vperm.xlu1 %531, %v45_v12   ;;  %v34_v22 = vpack.c.bf16 %v22_v19, %v21_v18  ;;  %v433_v23 = vld [vmem:[%s721_s2 + $0x30] sm:$0xff]  ;;  %v434_v24 = vld [vmem:[%s721_s2 + $0x38] sm:$0xff]  ;;  %v443_v25 = vld [vmem:[%s721_s2 + $0x40] sm:$0xff] }
   0x7   :  { %v23_v26 = vld [vmem:[%s719_s0 + $0x40] sm:$0xff]  ;;  %v24_v27 = vld [vmem:[%s719_s0 + $0x48] sm:$0xff]  ;;  %v445_v31 = vld [vmem:[%s721_s2 + $0x50] sm:$0xff] }
   0x8   :  { %v444_v28 = vld [vmem:[%s721_s2 + $0x48] sm:$0xff]  ;;  %v94_v29 = vsel %vm77_vm0, %v34_v22, 0  ;;  %v35_v30 = vpack.c.bf16 %v24_v27, %v23_v26  ;;  %v446_v32 = vld [vmem:[%s721_s2 + $0x58] sm:$0xff]  ;;  %v452_v33 = vld [vmem:[%s721_s2 + $0x60] sm:$0x3] }
   0x9   :  { %54 = vperm.xlu0 %530, %v44_v15   ;;  %v25_v34 = vld [vmem:[%s719_s0 + $0x50] sm:$0xff]  ;;  %v26_v35 = vld [vmem:[%s719_s0 + $0x58] sm:$0xff]  ;;  %v27_v38 = vld [vmem:[%s719_s0 + $0x60] sm:$0xff] }
   0xa   :  { %64 = vperm.xlu1 %531, %v46_v16   ;;  %v97_v36 = vsel %vm77_vm0, %v35_v30, 0  ;;  %v36_v37 = vpack.c.bf16 %v26_v35, %v25_v34  ;;  %v28_v39 = vld [vmem:[%s719_s0 + $0x68] sm:$0xff]  ;;  %v29_v42 = vld [vmem:[%s719_s0 + $0x70] sm:$0xff]  ;;  %v30_v43 = vld [vmem:[%s719_s0 + $0x78] sm:$0xff] }
   0xb   :  { %v37_v41 = vpack.c.bf16 %v28_v39, %v27_v38  ;;  %v38_v45 = vpack.c.bf16 %v30_v43, %v29_v42  ;;  %v533_v47 = vld [vmem:[%s720_s1 + $0x8] sm:$0xff]   ;;  %v534_v48 = vld [vmem:[%s720_s1 + $0x10] sm:$0xff]   ;;  %v535_v3 = vld [vmem:[%s720_s1 + $0x18] sm:$0xff]  }
   0xc   :  { %v100_v40 = vsel %vm77_vm0, %v36_v37, 0  ;;  %499 = vmatprep.mubr.msk.bf16.mxu1 %vm203_vm1, %v534_v48  ;;  %v536_v4 = vld [vmem:[%s720_s1 + $0x20] sm:$0xff]   ;;  %v451_v43 = vld [vmem:[%s720_s1 + $0x30] sm:$0x1] }
   0xd   :  { %478 = vmatpush3.bf16.xpose.msra.mxu0 %v88_v13  ;;  %175 = vperm.xlu0 %530, %v431_v17   ;;  %v103_v44 = vsel %vm77_vm0, %v37_v41, 0  ;;  %v106_v46 = vsel %vm77_vm0, %v38_v45, 0 }
   0xe   :  { %521 = vmatprep.subr.msk.bf16.mxu0 %vm77_vm0, %v33_v14  ;;  %180 = vperm.xlu1 %531, %v432_v20  }
  0x11   :  { %185 = vperm.xlu0 %530, %v433_v23   ;;  %v537_v23 = vld [vmem:[%s720_s1 + $0x28] sm:$0xff]  }
  0x12   :  { %190 = vperm.xlu1 %531, %v434_v24   ;;  %v563_v24 = vmov 0.0  }
  0x15   :  { %480 = vmatpush3.bf16.xpose.msra.mxu0 %v91_v21  ;;  %277 = vperm.xlu0 %530, %v443_v25  }
  0x16   :  { %522 = vmatprep.subr.msk.bf16.mxu0 %vm77_vm0, %v34_v22  ;;  %282 = vperm.xlu1 %531, %v444_v28  }
  0x19   :  { %287 = vperm.xlu0 %530, %v445_v31  }
  0x1a   :  { %292 = vperm.xlu1 %531, %v446_v32  }
  0x1d   :  { %482 = vmatpush3.bf16.xpose.msra.mxu0 %v94_v29  ;;  %372 = vperm.xlu0 %530, %v452_v33  }
  0x1e   :  { %523 = vmatprep.subr.msk.bf16.mxu0 %vm77_vm0, %v35_v30 }
  0x25   :  { %484 = vmatpush3.bf16.xpose.msra.mxu0 %v97_v36 }
  0x26   :  { %524 = vmatprep.subr.msk.bf16.mxu0 %vm77_vm0, %v36_v37 }
  0x2d   :  { %486 = vmatpush3.bf16.xpose.msra.mxu0 %v100_v40 }
  0x2e   :  { %525 = vmatprep.subr.msk.bf16.mxu0 %vm77_vm0, %v37_v41 }
  0x35   :  { %488 = vmatpush3.bf16.xpose.msra.mxu0 %v103_v44 }
  0x36   :  { %526 = vmatprep.subr.msk.bf16.mxu0 %vm77_vm0, %v38_v45 }
  0x3d   :  { %490 = vmatpush3.bf16.xpose.msra.mxu0 %v106_v46 }
  0x44   :  { %492 = vmatmul.mubr.msk.bf16.vlgmr.msra.gmra.mrb[0].mxu0 %vm77_vm0, %v533_v47 }
  0x84   :  { %v50_v50 = vpop.permute.xlu0 %49 }
  0x85   :  { %v60_v49 = vpop.permute.xlu1 %59 }
  0x88   :  { %v55_v57 = vpop.permute.xlu0 %54 }
  0x89   :  { %v65_v54 = vpop.permute.xlu1 %64 }
  0x8c   :  { %v176_v5 = vpop.permute.xlu0 %175 }
  0x8d   :  { %v181_v6 = vpop.permute.xlu1 %180 }
  0x90   :  { %v186_v7 = vpop.permute.xlu0 %185 }
  0x91   :  { %v191_v11 = vpop.permute.xlu1 %190 }
  0x94   :  { %v278_v25 = vpop.permute.xlu0 %277 }
  0x95   :  { %v283_v26 = vpop.permute.xlu1 %282 }
  0x98   :  { %v288_v27 = vpop.permute.xlu0 %287 }
  0x99   :  { %v293_v31 = vpop.permute.xlu1 %292 }
  0x9c   :  { %v373_v44 = vpop.permute.xlu0 %372 }
 0x117   :  { %v493_v51 = vpop.f32.mrb[0].mxu0 }
 0x118   :  { %v151_v52 = vadd.f32 %v493_v51, %v60_v49  ;;  %v142_v53 = vpop.f32.mrb[1].mxu0 }
 0x119   :  { %v143_v55 = vadd.f32 %v142_v53, %v50_v50  ;;  %v494_v56 = vpop.f32.mrb[2].mxu0 }
 0x11a   :  { %538 = vtanh.f32 %v151_v52  ;;  %v154_v58 = vadd.f32 %v494_v56, %v65_v54  ;;  %v145_v59 = vpop.f32.mrb[3].mxu0 }
 0x11b   :  { %540 = vtanh.f32 %v143_v55  ;;  %v146_v60 = vadd.f32 %v145_v59, %v55_v57 }
 0x11c   :  { %542 = vtanh.f32 %v154_v58 }
 0x11d   :  { %544 = vtanh.f32 %v146_v60 }
 0x124   :  { %v539_v61 = vpop.eup %538 }
 0x125   :  { %v541_v62 = vpop.eup %540 }
 0x126   :  { %v543_v63 = vpop.eup %542 }
 0x127   :  { %v545_v0 = vpop.eup %544  ;;  %v167_v1 = vpack.c.bf16 %v543_v63, %v539_v61 }
 0x128   :  { %v166_v2 = vpack.c.bf16 %v545_v0, %v541_v62 }
 0x12a   :  { %495 = vmatprep.subr.bf16.mxu1 %v166_v2 }
 0x12b   :  { %496 = vmatpush3.bf16.msra.mxu1 %v166_v2 }
 0x12c   :  { %497 = vmatprep.subr.bf16.mxu1 %v167_v1 }
 0x12f   :  { %498 = vmatpush3.bf16.msra.mxu1 %v167_v1 }
 0x132   :  { %500 = vmatmul.mubr.msk.bf16.vlgmr.msra.gmra.mrb[0].mxu1 %vm203_vm1, %v535_v3 }
 0x133   :  { %507 = vmatprep.mubr.msk.bf16.mxu1 %vm203_vm1, %v536_v4 }
 0x205   :  { %v501_v8 = vpop.f32.mrb[0].mxu1 }
 0x206   :  { %v253_v9 = vadd.f32 %v501_v8, %v186_v7  ;;  %v244_v10 = vpop.f32.mrb[1].mxu1 }
 0x207   :  { %v245_v12 = vadd.f32 %v244_v10, %v176_v5  ;;  %v502_v13 = vpop.f32.mrb[2].mxu1 }
 0x208   :  { %546 = vtanh.f32 %v253_v9  ;;  %v256_v14 = vadd.f32 %v502_v13, %v191_v11  ;;  %v247_v15 = vpop.f32.mrb[3].mxu1 }
 0x209   :  { %548 = vtanh.f32 %v245_v12  ;;  %v248_v16 = vadd.f32 %v247_v15, %v181_v6 }
 0x20a   :  { %550 = vtanh.f32 %v256_v14 }
 0x20b   :  { %552 = vtanh.f32 %v248_v16 }
 0x212   :  { %v547_v17 = vpop.eup %546 }
 0x213   :  { %v549_v18 = vpop.eup %548 }
 0x214   :  { %v551_v19 = vpop.eup %550 }
 0x215   :  { %v553_v20 = vpop.eup %552  ;;  %v269_v21 = vpack.c.bf16 %v551_v19, %v547_v17 }
 0x216   :  { %v268_v22 = vpack.c.bf16 %v553_v20, %v549_v18 }
 0x218   :  { %503 = vmatprep.subr.bf16.mxu1 %v268_v22 }
 0x219   :  { %504 = vmatpush3.bf16.msra.mxu1 %v268_v22 }
 0x21a   :  { %505 = vmatprep.subr.bf16.mxu1 %v269_v21 }
 0x21d   :  { %506 = vmatpush3.bf16.msra.mxu1 %v269_v21 }
 0x21e   :  { %511 = vmatprep.subr.bf16.mxu1 %v563_v24 }
 0x220   :  { %508 = vmatmul.mubr.msk.bf16.vlgmr.msra.gmra.mrb[4].mxu1 %vm203_vm1, %v537_v23 }
 0x221   :  { %515 = vmatprep.mubr.msk.bf16.mxu1 %vm564_vm2, %v563_v24 }
 0x2f3   :  { %v509_v28 = vpop.f32.mrb[4].mxu1 }
 0x2f4   :  { %v354_v29 = vadd.f32 %v509_v28, %v288_v27  ;;  %v345_v30 = vpop.f32.mrb[5].mxu1 }
 0x2f5   :  { %v346_v32 = vadd.f32 %v345_v30, %v278_v25  ;;  %v510_v33 = vpop.f32.mrb[6].mxu1 }
 0x2f6   :  { %554 = vtanh.f32 %v354_v29  ;;  %v357_v34 = vadd.f32 %v510_v33, %v293_v31  ;;  %v348_v35 = vpop.f32.mrb[7].mxu1 }
 0x2f7   :  { %556 = vtanh.f32 %v346_v32  ;;  %v349_v36 = vadd.f32 %v348_v35, %v283_v26 }
 0x2f8   :  { %558 = vtanh.f32 %v357_v34 }
 0x2f9   :  { %560 = vtanh.f32 %v349_v36 }
 0x300   :  { %v555_v37 = vpop.eup %554 }
 0x301   :  { %v557_v38 = vpop.eup %556 }
 0x302   :  { %v559_v39 = vpop.eup %558 }
 0x303   :  { %v561_v40 = vpop.eup %560  ;;  %v367_v41 = vpack.c.bf16 %v559_v39, %v555_v37 }
 0x304   :  { %v366_v42 = vpack.c.bf16 %v561_v40, %v557_v38 }
 0x306   :  { %512 = vmatpush3.bf16.msra.mxu1 %v366_v42 }
 0x307   :  { %513 = vmatprep.subr.bf16.mxu1 %v563_v24 }
 0x30a   :  { %514 = vmatpush3.bf16.msra.mxu1 %v367_v41 }
 0x30d   :  { %516 = vmatmul.mubr.msk.bf16.vlgmr.msra.gmra.mrb[8].mxu1 %vm203_vm1, %v451_v43 }
 0x3e0   :  { %v412_v45 = vpop.f32.mrb[8].mxu1 }
 0x3e1   :  { %v413_v46 = vadd.f32 %v412_v45, %v373_v44  ;;  %v517_v47 = vpop.f32.mrb[9].mxu1 }
 0x3e2   :  { %v415_v48 = vpop.f32.mrb[10].mxu1 }
 0x3e3   :  { %418 = vst [vmem:[%s722_s3] sm:$0x3] %v413_v46  ;;  %v518_v49 = vpop.f32.mrb[11].mxu1 }

</bundles_post_ra>
